<compile_context>
chip_gen: v6e
topology: v6e:2x2x1
jax: 0.10.0
libtpu: 0.0.40
codegen_flags: <defaults>
</compile_context>

<pallas_src>
import functools

import jax
import jax.numpy as jnp
from jax import lax
from jax.experimental import pallas as pl
from jax.experimental.pallas import tpu as pltpu


# --------------- kernel 1: Wh = h @ W,  s1 = Wh @ a1,  s2 = Wh @ a2 ---------------

def _project_kernel(h_ref, w_ref, a1_ref, a2_ref, wh_ref, s1_ref, s2_ref):
    wh = jnp.dot(
        h_ref[...].astype(jnp.float32),
        w_ref[...].astype(jnp.float32),
        preferred_element_type=jnp.float32,
    )                                                                   # (tm, F')
    wh_ref[...] = wh.astype(wh_ref.dtype)
    # Contract on the LAST dims of both operands -> no in-kernel transpose.
    s1_ref[...] = lax.dot_general(wh, a1_ref[...],
                                  (((1,), (1,)), ((), ())),
                                  preferred_element_type=jnp.float32)   # (tm, 1)
    s2_ref[...] = lax.dot_general(wh, a2_ref[...],
                                  (((1,), (1,)), ((), ())),
                                  preferred_element_type=jnp.float32)   # (tm, 1)


# ------------- kernel 2: masked attention + online softmax + aggregate ------------

def _gat_attention_kernel(wh_j_ref, bias_ref, s1_ref, s2_ref,
                          out_ref, m_scr, l_scr, acc_scr, *, alpha, concat):
    j = pl.program_id(1)

    @pl.when(j == 0)
    def _():
        m_scr[...] = jnp.full_like(m_scr, -jnp.inf)
        l_scr[...] = jnp.zeros_like(l_scr)
        acc_scr[...] = jnp.zeros_like(acc_scr)

    wh_j = wh_j_ref[...]                                  # (tn, F') f32

    # e[i,j] = LeakyReLU(s1[i] + s2[j]) + mask_bias[i,j]   (pure VPU)
    e = s1_ref[...] + s2_ref[...]                         # (tm,1)+(1,tn) -> (tm,tn)
    e = jnp.maximum(e, alpha * e)                         # LeakyReLU, 0 < alpha < 1
    e = e + bias_ref[...].astype(jnp.float32)             # additive adjacency mask

    # Online (flash-style) softmax over the column (j) axis.
    m_prev = m_scr[...]
    m_new = jnp.maximum(m_prev, jnp.max(e, axis=-1, keepdims=True))     # (tm, 1)
    p = jnp.exp(e - m_new)                                              # (tm, tn), <= 1
    scale = jnp.exp(m_prev - m_new)                                     # (tm, 1)
    l_scr[...] = scale * l_scr[...] + jnp.sum(p, axis=-1, keepdims=True)
    # bf16 MXU fast path, f32 accumulation.
    acc_scr[...] = scale * acc_scr[...] + jnp.dot(
        p.astype(jnp.bfloat16), wh_j.astype(jnp.bfloat16),
        preferred_element_type=jnp.float32)                             # (tm, F')
    m_scr[...] = m_new

    # TODO(synk): F.dropout(attention, p) with p > 0 is stochastic; only the
    # deterministic dropout == 0 path is implemented in-kernel.

    @pl.when(j == pl.num_programs(1) - 1)
    def _():
        h_prime = acc_scr[...] * pl.reciprocal(l_scr[...], approx=True)  # normalize (EUP)
        if concat:
            # ELU. exp(x)-1 instead of expm1 (guaranteed Mosaic lowering); the
            # f32 absolute error (<~1e-7) is far inside the comparison tolerance.
            h_prime = jnp.where(h_prime > 0, h_prime, jnp.exp(h_prime) - 1.0)
        out_ref[...] = h_prime.astype(out_ref.dtype)


# ----------------------------------- wrapper --------------------------------------

def graph_attention_layer_forward(h, adj, W, a, *, alpha=0.2, concat=True,
                                  dropout=0.0, tile_m=256, tile_n=512):
    """h: (N, F_in) f32, adj: (N, N), W: (F_in, F_out) f32, a: (2*F_out, 1) f32."""
    n, f_in = h.shape
    f_out = W.shape[1]
    assert adj.shape == (n, n)
    assert a.shape == (2 * f_out, 1)
    assert dropout == 0.0, "only the deterministic dropout=0.0 path is implemented"

    tm = min(tile_m, n)
    tn = min(tile_n, n)
    assert n % tm == 0 and n % tn == 0, "N must be divisible by the tile sizes"

    # Split a into two (1, F') row vectors so all contractions are on last dims.
    a1 = a[:f_out, :].reshape(1, f_out)
    a2 = a[f_out:, :].reshape(1, f_out)

    # --- kernel 1: Wh = h @ W, plus the per-row attention scalars s1, s2 ---
    wh, s1, s2_col = pl.pallas_call(
        _project_kernel,
        out_shape=(jax.ShapeDtypeStruct((n, f_out), jnp.float32),
                   jax.ShapeDtypeStruct((n, 1), jnp.float32),
                   jax.ShapeDtypeStruct((n, 1), jnp.float32)),
        grid=(n // tm,),
        in_specs=[pl.BlockSpec((tm, f_in), lambda i: (i, 0)),
                  pl.BlockSpec((f_in, f_out), lambda i: (0, 0)),
                  pl.BlockSpec((1, f_out), lambda i: (0, 0)),
                  pl.BlockSpec((1, f_out), lambda i: (0, 0))],
        out_specs=(pl.BlockSpec((tm, f_out), lambda i: (i, 0)),
                   pl.BlockSpec((tm, 1), lambda i: (i, 0)),
                   pl.BlockSpec((tm, 1), lambda i: (i, 0))),
        compiler_params=pltpu.CompilerParams(dimension_semantics=("parallel",)),
    )(h, W, a1, a2)

    # s2 is indexed by the key/column node -> present as a (1, N) row vector.
    s2_row = s2_col.reshape(1, n)

    # Additive mask bias in bf16: halves the dominant HBM stream vs f32 adj and
    # replaces the in-kernel compare+select with one add. -9e15 is bf16-representable,
    # so masked logits still underflow to exactly 0 after exp.
    bias = jnp.where(adj > 0, jnp.float32(0.0), jnp.float32(-9e15)).astype(jnp.bfloat16)

    kernel = functools.partial(_gat_attention_kernel,
                               alpha=float(alpha), concat=bool(concat))

    out = pl.pallas_call(
        kernel,
        out_shape=jax.ShapeDtypeStruct((n, f_out), jnp.float32),
        grid=(n // tm, n // tn),
        in_specs=[
            pl.BlockSpec((tn, f_out), lambda i, j: (j, 0)),   # Wh row block (keys/values)
            pl.BlockSpec((tm, tn), lambda i, j: (i, j)),      # bf16 mask-bias tile
            pl.BlockSpec((tm, 1), lambda i, j: (i, 0)),       # s1 (query-side scalar)
            pl.BlockSpec((1, tn), lambda i, j: (0, j)),       # s2 (key-side scalar)
        ],
        out_specs=pl.BlockSpec((tm, f_out), lambda i, j: (i, 0)),
        scratch_shapes=[
            pltpu.VMEM((tm, 1), jnp.float32),       # running row max
            pltpu.VMEM((tm, 1), jnp.float32),       # running row sum
            pltpu.VMEM((tm, f_out), jnp.float32),   # running weighted sum of Wh
        ],
        compiler_params=pltpu.CompilerParams(
            dimension_semantics=("parallel", "arbitrary")),
    )(wh, bias, s1, s2_row)
    return out


# ------------------------------------ demo -----------------------------------------

if __name__ == "__main__":
    # F_OUT = 128 keeps the output lane-dense (unmasked vst); for small F'
    # (e.g. 32) pack several GAT heads along the last dim instead.
    N, F_IN, F_OUT = 1024, 64, 128
    ALPHA = 0.2
    DROPOUT = 0.0      # deterministic path (see TODO in kernel)
    CONCAT = True

    key = jax.random.PRNGKey(0)
    k_h, k_adj, k_w, k_a = jax.random.split(key, 4)

    h = jax.random.normal(k_h, (N, F_IN), dtype=jnp.float32)

    # Sparse-ish adjacency with self loops (self loops guarantee every row has
    # at least one unmasked neighbor, as assumed by the -9e15 masking trick).
    adj = (jax.random.uniform(k_adj, (N, N)) < 0.1).astype(jnp.float32)
    adj = jnp.maximum(adj, jnp.eye(N, dtype=jnp.float32))

    # xavier_uniform_ with gain=1.414 (PyTorch convention: fan_in = dim1, fan_out = dim0).
    def xavier_uniform(k, shape, gain=1.414):
        fan_in, fan_out = shape[1], shape[0]
        bound = gain * (6.0 / (fan_in + fan_out)) ** 0.5
        return jax.random.uniform(k, shape, jnp.float32, -bound, bound)

    W = xavier_uniform(k_w, (F_IN, F_OUT))
    a = xavier_uniform(k_a, (2 * F_OUT, 1))

    out = graph_attention_layer_forward(h, adj, W, a,
                                        alpha=ALPHA, concat=CONCAT, dropout=DROPOUT)
    jax.block_until_ready(out)

    # ---- pure-JAX reference (full f32) ----
    Wh = h @ W
    e = (Wh @ a[:F_OUT, 0])[:, None] + (Wh @ a[F_OUT:, 0])[None, :]
    e = jnp.where(e > 0, e, ALPHA * e)
    att = jnp.where(adj > 0, e, -9e15)
    att = jax.nn.softmax(att, axis=1)
    h_prime = att @ Wh
    ref = jnp.where(h_prime > 0, h_prime, jnp.expm1(h_prime)) if CONCAT else h_prime

    # Tolerance accounts for the bf16 MXU fast path in p @ Wh and the EUP
    # approximate reciprocal in the softmax normalization.
    max_err = float(jnp.max(jnp.abs(out - ref)))
    assert jnp.allclose(out, ref, rtol=3e-2, atol=3e-2), max_err

    print("KERNEL_OK")
</pallas_src>

<mosaic_0001>
module attributes {stable_mosaic.version = 11 : i64} {
  func.func @_project_kernel(%arg0: i32, %arg1: memref<256x64xf32, #tpu.memory_space<vmem>>, %arg2: memref<64x128xf32, #tpu.memory_space<vmem>>, %arg3: memref<1x128xf32, #tpu.memory_space<vmem>>, %arg4: memref<1x128xf32, #tpu.memory_space<vmem>>, %arg5: memref<256x128xf32, #tpu.memory_space<vmem>>, %arg6: memref<256x1xf32, #tpu.memory_space<vmem>>, %arg7: memref<256x1xf32, #tpu.memory_space<vmem>>) attributes {dimension_semantics = [#tpu.dimension_semantics<parallel>], iteration_bounds = array<i64: 4>, scalar_prefetch = 0 : i64, scratch_operands = 0 : i64, tpu.core_type = #tpu.core_type<tc>, window_params = [{transform_indices = @transform_0, window_bounds = array<i64: 256, 64>}, {pipeline_mode = #tpu.pipeline_mode<synchronous>, transform_indices = @transform_1, window_bounds = array<i64: 64, 128>}, {pipeline_mode = #tpu.pipeline_mode<synchronous>, transform_indices = @transform_2, window_bounds = array<i64: 1, 128>}, {pipeline_mode = #tpu.pipeline_mode<synchronous>, transform_indices = @transform_3, window_bounds = array<i64: 1, 128>}, {transform_indices = @transform_4, window_bounds = array<i64: 256, 128>}, {transform_indices = @transform_5, window_bounds = array<i64: 256, 1>}, {transform_indices = @transform_6, window_bounds = array<i64: 256, 1>}]} {
    %c0 = arith.constant 0 : index
    %c0_0 = arith.constant 0 : index
    %0 = vector.load %arg1[%c0, %c0_0] : memref<256x64xf32, #tpu.memory_space<vmem>>, vector<256x64xf32>
    %c0_1 = arith.constant 0 : index
    %c0_2 = arith.constant 0 : index
    %1 = vector.load %arg2[%c0_1, %c0_2] : memref<64x128xf32, #tpu.memory_space<vmem>>, vector<64x128xf32>
    %cst = arith.constant dense<0.000000e+00> : vector<256x128xf32>
    %2 = tpu.matmul %0, %1, %cst {dimension_numbers = #tpu.dot_dimension_numbers<[1], [0], [0], [1], [0, 0, 1, 1], [], []>} : vector<256x64xf32>, vector<64x128xf32>, vector<256x128xf32> -> vector<256x128xf32>
    %c0_3 = arith.constant 0 : index
    %c0_4 = arith.constant 0 : index
    %3 = vector.load %arg5[%c0_3, %c0_4] : memref<256x128xf32, #tpu.memory_space<vmem>>, vector<256x128xf32>
    tpu.vector_store %arg5[%c0_3, %c0_4], %2 {strides = array<i32>} : memref<256x128xf32, #tpu.memory_space<vmem>>, vector<256x128xf32>,
    %c0_5 = arith.constant 0 : index
    %c0_6 = arith.constant 0 : index
    %4 = vector.load %arg3[%c0_5, %c0_6] : memref<1x128xf32, #tpu.memory_space<vmem>>, vector<1x128xf32>
    %cst_7 = arith.constant dense<0.000000e+00> : vector<256x1xf32>
    %5 = tpu.matmul %2, %4, %cst_7 {dimension_numbers = #tpu.dot_dimension_numbers<[1], [1], [0], [0], [0, 0, 1, 0], [], []>} : vector<256x128xf32>, vector<1x128xf32>, vector<256x1xf32> -> vector<256x1xf32>
    %c0_8 = arith.constant 0 : index
    %c0_9 = arith.constant 0 : index
    %6 = vector.load %arg6[%c0_8, %c0_9] : memref<256x1xf32, #tpu.memory_space<vmem>>, vector<256x1xf32>
    tpu.vector_store %arg6[%c0_8, %c0_9], %5 {strides = array<i32>} : memref<256x1xf32, #tpu.memory_space<vmem>>, vector<256x1xf32>,
    %c0_10 = arith.constant 0 : index
    %c0_11 = arith.constant 0 : index
    %7 = vector.load %arg4[%c0_10, %c0_11] : memref<1x128xf32, #tpu.memory_space<vmem>>, vector<1x128xf32>
    %cst_12 = arith.constant dense<0.000000e+00> : vector<256x1xf32>
    %8 = tpu.matmul %2, %7, %cst_12 {dimension_numbers = #tpu.dot_dimension_numbers<[1], [1], [0], [0], [0, 0, 1, 0], [], []>} : vector<256x128xf32>, vector<1x128xf32>, vector<256x1xf32> -> vector<256x1xf32>
    %c0_13 = arith.constant 0 : index
    %c0_14 = arith.constant 0 : index
    %9 = vector.load %arg7[%c0_13, %c0_14] : memref<256x1xf32, #tpu.memory_space<vmem>>, vector<256x1xf32>
    tpu.vector_store %arg7[%c0_13, %c0_14], %8 {strides = array<i32>} : memref<256x1xf32, #tpu.memory_space<vmem>>, vector<256x1xf32>,
    return
  }
  func.func @transform_0(%arg0: i32) -> (i32, i32) {
    %c0_i32 = arith.constant 0 : i32
    %c0_i32_0 = arith.constant 0 : i32
    return %arg0, %c0_i32 : i32, i32
  }
  func.func @transform_1(%arg0: i32) -> (i32, i32) {
    %c0_i32 = arith.constant 0 : i32
    %c0_i32_0 = arith.constant 0 : i32
    %c0_i32_1 = arith.constant 0 : i32
    return %c0_i32, %c0_i32_0 : i32, i32
  }
  func.func @transform_2(%arg0: i32) -> (i32, i32) {
    %c0_i32 = arith.constant 0 : i32
    %c0_i32_0 = arith.constant 0 : i32
    %c0_i32_1 = arith.constant 0 : i32
    return %c0_i32, %c0_i32_0 : i32, i32
  }
  func.func @transform_3(%arg0: i32) -> (i32, i32) {
    %c0_i32 = arith.constant 0 : i32
    %c0_i32_0 = arith.constant 0 : i32
    %c0_i32_1 = arith.constant 0 : i32
    return %c0_i32, %c0_i32_0 : i32, i32
  }
  func.func @transform_4(%arg0: i32) -> (i32, i32) {
    %c0_i32 = arith.constant 0 : i32
    %c0_i32_0 = arith.constant 0 : i32
    return %arg0, %c0_i32 : i32, i32
  }
  func.func @transform_5(%arg0: i32) -> (i32, i32) {
    %c0_i32 = arith.constant 0 : i32
    %c0_i32_0 = arith.constant 0 : i32
    return %arg0, %c0_i32 : i32, i32
  }
  func.func @transform_6(%arg0: i32) -> (i32, i32) {
    %c0_i32 = arith.constant 0 : i32
    %c0_i32_0 = arith.constant 0 : i32
    return %arg0, %c0_i32 : i32, i32
  }
}

</mosaic_0001>

<bundles_post_ra>
// kernel: tpu_custom_call.1
= control target key start
LH: loop header
LB: loop body
LE: loop exit
PB: predicated region body
PF: predicated region fallthrough
CT: control target
= control target key end

     0   :  { %12 = vsyncpa [#allocation3], 0  ;;  %s2001_s0 = inlined_call_operand.vmem [shape: f32[1024,64], index: 0, kind: input, shape index: {}]   ;;  %s2002_s1 = inlined_call_operand.vmem [shape: f32[64,128], index: 1, kind: input, shape index: {}]   ;;  %s2003_s2 = inlined_call_operand.vmem [shape: f32[1,128], index: 2, kind: input, shape index: {}]   ;;  %s2004_s3 = inlined_call_operand.vmem [shape: f32[1,128], index: 3, kind: input, shape index: {}]   ;;  %s2005_s4 = inlined_call_operand.hbm [shape: f32[1024,128], index: 4, kind: output, shape index: {0}]   ;;  %s2006_s5 = inlined_call_operand.vmem [shape: f32[1024,1], index: 5, kind: output, shape index: {1}]   ;;  %s2007_s6 = inlined_call_operand.vmem [shape: f32[1024,1], index: 6, kind: output, shape index: {2}]  }
   0x1   :  { %14 = vsyncpa [#allocation3 + $0x1], 0  ;;  %s1401_s21 = smov 0   ;;  %s1403_s22 = smov 0  }
   0x2   :  { %s1405_s23 = smov 0   ;;  %s1407_s24 = smov 0  }
   0x3 LB: > { %s1422_s25 = sadd.s32 4294967295, %s1361_s24   ;;  %s1089_s26 = sadd.s32 4294967294, %s1361_s24   ;;  %s1361_s24 = sphi %s1407_s24, %s2013_s24   ;;  %s1357_s23 = sphi %s1405_s23, %s2012_s23   ;;  %s1353_s22 = sphi %s1403_s22, %s2011_s22   ;;  %s1349_s21 = sphi %s1401_s21, %s2010_s21  }
   0x4   : > { %s1426_s27 = sadd.s32 1, %s1361_s24   ;;  %s116_s28 = sadd.s32 1, %s1357_s23 }
   0x5   : > { %s113_s29 = ssub.s32 %s1361_s24, %s1426_s27  ;;  %p126_p0 = scmp.ne.s32.totalorder %s1357_s23, %s1353_s22 }
   0x6   : > { %p114_p1 = scmp.eq.s32.totalorder %s113_s29, 0  ;;  %p127_p2 = scmp.eq.s32.totalorder %s1422_s25, 3 }
   0x7   : > { %p132_p3 = scmp.ne.s32.totalorder %s1353_s22, %s1349_s21  ;;  %p133_p4 = scmp.eq.s32.totalorder %s1089_s26, 3 }
   0x8   : > { %s1437_s30 = scalar_select %p114_p1, %s1357_s23, %s116_s28  }
   0x9   : > { %p1439_p5 = por %p127_p2, %p126_p0  ;;  %p1443_p6 = por %p133_p4, %p132_p3 }
   0xa   : > { %p1092_p7 = scmp.ge.s32.totalorder %s1361_s24, 1  ;;  %p221_p8 = scmp.lt.s32.totalorder %s1361_s24, 5 }
   0xc   : > { %p222_p9 = pnand %p1092_p7, %p221_p8 }
   0xd   : > { %s1094_s13 = sshll.u32 (!%p222_p9), %s1422_s25, 5  ;;  %s244_s15 = sand.u32 (!%p222_p9), 1, %s1353_s22  }
   0xe   : > { %225 = sbr.rel (%p222_p9) target bundleno = 503 (0x1f7), region = 36  ;;  %p262_p10 = scmp.lt.s32.totalorder (!%p222_p9), %s1094_s13, 127 }
   0xf   : > { %s1093_s16 = sshll.u32 (!%p222_p9), %s244_s15, 8  ;;  %s1139_s11 = sshll.u32 (!%p222_p9), %s1422_s25, 12 }
  0x10   : > { %s1554_s19 = scalar_lea.vmem (!%p222_p9), [#allocation2], %s1093_s16  ;;  %s1821_s16 = scalar_lea.hbm (!%p222_p9), %s2005_s4, %s1139_s11 }
  0x11   : > { %s1827_s17 = scalar_lea.sflag (!%p222_p9), [#allocation3], %s244_s15  ;;  %s1363_s25 = smov (!%p222_p9), [#allocation2]  }
  0x13   : > { %v319_v0 = vld [vmem:[%s2002_s1 + $0x38] sm:$0xff]  ;;  %v318_v1 = vld [vmem:[%s2002_s1 + $0x30] sm:$0xff]  ;;  %v317_v2 = vld [vmem:[%s2002_s1 + $0x28] sm:$0xff]  ;;  %s2015_s13 = smov (!%p262_p10, %s1094_s13), 127  ;;  %vm320_vm0 = vcmask 523264   ;;  %vm777_vm1 = vcmask 7168  }
  0x14   : > { %1180 = vmatprep.subr.mxu0 %v319_v0  ;;  %1244 = vmatprep.subr.mxu1 %v319_v0  ;;  %v316_v3 = vld [vmem:[%s2002_s1 + $0x20] sm:$0xff]  ;;  %v315_v4 = vld [vmem:[%s2002_s1 + $0x18] sm:$0xff]  ;;  %v314_v5 = vld [vmem:[%s2002_s1 + $0x10] sm:$0xff]  ;;  %s1468_s28 = sshll.u32 %s2015_s13, 3 }
  0x15   : > { %1181 = vmatpush3.msra.mxu0 %v319_v0  ;;  %1252 = vmatpush3.msra.mxu1 %v319_v0  ;;  %v313_v6 = vld [vmem:[%s2002_s1 + $0x8] sm:$0xff]  ;;  %s1477_s12 = scalar_lea.vmem %s2001_s0, %s1468_s28  ;;  %v312_v7 = vld [vmem:[%s2002_s1] sm:$0xff]  ;;  %s1814_s10 = scalar_lea.vmem %s2006_s5, %s1468_s28 }
  0x16   : > { %1182 = vmatprep.subr.mxu0 %v318_v1  ;;  %1245 = vmatprep.subr.mxu1 %v318_v1  ;;  %v280_v8 = vld [vmem:[%s1477_s12] sm:$0xff]  ;;  %v281_v10 = vld [vmem:[%s1477_s12 + $0x8] sm:$0xff]  ;;  %v282_v12 = vld [vmem:[%s1477_s12 + $0x10] sm:$0xff] }
  0x17   : > { %1183 = vmatpush3.msra.mxu0 %v318_v1  ;;  %1253 = vmatpush3.msra.mxu1 %v318_v1  ;;  %v296_v9 = vld [vmem:[%s1477_s12 + $0x80] sm:$0xff]  ;;  %v297_v11 = vld [vmem:[%s1477_s12 + $0x88] sm:$0xff]  ;;  %v298_v13 = vld [vmem:[%s1477_s12 + $0x90] sm:$0xff] }
  0x18   : > { %1184 = vmatprep.subr.mxu0 %v317_v2  ;;  %1246 = vmatprep.subr.mxu1 %v317_v2  ;;  %v283_v14 = vld [vmem:[%s1477_s12 + $0x18] sm:$0xff]  ;;  %v284_v16 = vld [vmem:[%s1477_s12 + $0x20] sm:$0xff]  ;;  %v285_v18 = vld [vmem:[%s1477_s12 + $0x28] sm:$0xff] }
  0x19   : > { %1185 = vmatpush3.msra.mxu0 %v317_v2  ;;  %1254 = vmatpush3.msra.mxu1 %v317_v2  ;;  %v299_v15 = vld [vmem:[%s1477_s12 + $0x98] sm:$0xff]  ;;  %v300_v17 = vld [vmem:[%s1477_s12 + $0xa0] sm:$0xff]  ;;  %v301_v19 = vld [vmem:[%s1477_s12 + $0xa8] sm:$0xff] }
  0x1a   : > { %1186 = vmatprep.subr.mxu0 %v316_v3  ;;  %1247 = vmatprep.subr.mxu1 %v316_v3  ;;  %v286_v20 = vld [vmem:[%s1477_s12 + $0x30] sm:$0xff]  ;;  %v287_v22 = vld [vmem:[%s1477_s12 + $0x38] sm:$0xff]  ;;  %v288_v24 = vld [vmem:[%s1477_s12 + $0x40] sm:$0xff] }
  0x1b   : > { %1187 = vmatpush3.msra.mxu0 %v316_v3  ;;  %1255 = vmatpush3.msra.mxu1 %v316_v3  ;;  %v302_v21 = vld [vmem:[%s1477_s12 + $0xb0] sm:$0xff]  ;;  %v303_v23 = vld [vmem:[%s1477_s12 + $0xb8] sm:$0xff]  ;;  %v304_v25 = vld [vmem:[%s1477_s12 + $0xc0] sm:$0xff] }
  0x1c   : > { %1188 = vmatprep.subr.mxu0 %v315_v4  ;;  %1248 = vmatprep.subr.mxu1 %v315_v4  ;;  %v289_v26 = vld [vmem:[%s1477_s12 + $0x48] sm:$0xff]  ;;  %v290_v28 = vld [vmem:[%s1477_s12 + $0x50] sm:$0xff]  ;;  %v291_v30 = vld [vmem:[%s1477_s12 + $0x58] sm:$0xff] }
  0x1d   : > { %1189 = vmatpush3.msra.mxu0 %v315_v4  ;;  %1256 = vmatpush3.msra.mxu1 %v315_v4  ;;  %v305_v27 = vld [vmem:[%s1477_s12 + $0xc8] sm:$0xff]  ;;  %v306_v29 = vld [vmem:[%s1477_s12 + $0xd0] sm:$0xff]  ;;  %v307_v31 = vld [vmem:[%s1477_s12 + $0xd8] sm:$0xff] }
  0x1e   : > { %1190 = vmatprep.subr.mxu0 %v314_v5  ;;  %1249 = vmatprep.subr.mxu1 %v314_v5  ;;  %v292_v32 = vld [vmem:[%s1477_s12 + $0x60] sm:$0xff]  ;;  %v293_v34 = vld [vmem:[%s1477_s12 + $0x68] sm:$0xff]  ;;  %v294_v36 = vld [vmem:[%s1477_s12 + $0x70] sm:$0xff] }
  0x1f   : > { %1191 = vmatpush3.msra.mxu0 %v314_v5  ;;  %1257 = vmatpush3.msra.mxu1 %v314_v5  ;;  %v308_v33 = vld [vmem:[%s1477_s12 + $0xe0] sm:$0xff]  ;;  %v309_v35 = vld [vmem:[%s1477_s12 + $0xe8] sm:$0xff]  ;;  %v310_v37 = vld [vmem:[%s1477_s12 + $0xf0] sm:$0xff] }
  0x20   : > { %1192 = vmatprep.subr.mxu0 %v313_v6  ;;  %1250 = vmatprep.subr.mxu1 %v313_v6  ;;  %v295_v38 = vld [vmem:[%s1477_s12 + $0x78] sm:$0xff]  ;;  %v1552_v40 = vld [vmem:[%s2003_s2] ss:$0 sm:$0xff] }
  0x21   : > { %1193 = vmatpush3.msra.mxu0 %v313_v6  ;;  %1258 = vmatpush3.msra.mxu1 %v313_v6  ;;  %v311_v39 = vld [vmem:[%s1477_s12 + $0xf8] sm:$0xff]  ;;  %v1563_v47 = vld [vmem:[%s2004_s3] ss:$0 sm:$0xff]  ;;  %s969_s12 = sshll.u32 %s1554_s19, 4  ;;  %s1823_s12 = int_to_ptr.vmem [resolvable:$true] %s969_s12 }
  0x22   : > { %1194 = vmatprep.subr.mxu0 %v312_v7  ;;  %1251 = vmatprep.subr.mxu1 %v312_v7  ;;  %s1301_s18 = scalar_lea.vmem %s1823_s12, 4096 }
  0x23   : > { %1195 = vmatpush3.msra.mxu0 %v312_v7  ;;  %1259 = vmatpush3.msra.mxu1 %v312_v7  ;;  %p1302_p11 = scmp.ne.s32.totalorder %s1823_s12, %s1301_s18 }
  0x24   : > { %1196 = vmatprep.mubr.msk.f32.mxu0 %vm320_vm0, %v280_v8  ;;  %1220 = vmatprep.mubr.msk.f32.mxu1 %vm320_vm0, %v296_v9 }
  0x25   : > { %1197 = vmatmul.mubr.msk.f32.vlgmr.msra.gmra.mxu0 %vm320_vm0, %v281_v10  ;;  %1221 = vmatmul.mubr.msk.f32.vlgmr.msra.gmra.mxu1 %vm320_vm0, %v297_v11  ;;  %p1303_p12 = pnand %p1302_p11, %p1439_p5 }
  0x26   : > { %1199 = vmatprep.mubr.msk.f32.mxu0 %vm320_vm0, %v282_v12  ;;  %1223 = vmatprep.mubr.msk.f32.mxu1 %vm320_vm0, %v298_v13 }
  0x27   : > { %p1304_p13 = pneg %p1303_p12 }
  0x29   : > { %1200 = vmatmul.mubr.msk.f32.gmra.mxu0 %vm320_vm0, %v283_v14  ;;  %1224 = vmatmul.mubr.msk.f32.gmra.mxu1 %vm320_vm0, %v299_v15 }
  0x2a   : > { %1202 = vmatprep.mubr.msk.f32.mxu0 %vm320_vm0, %v284_v16  ;;  %1226 = vmatprep.mubr.msk.f32.mxu1 %vm320_vm0, %v300_v17 }
  0x2d   : > { %1203 = vmatmul.mubr.msk.f32.gmra.mxu0 %vm320_vm0, %v285_v18  ;;  %1227 = vmatmul.mubr.msk.f32.gmra.mxu1 %vm320_vm0, %v301_v19 }
  0x2e   : > { %1205 = vmatprep.mubr.msk.f32.mxu0 %vm320_vm0, %v286_v20  ;;  %1229 = vmatprep.mubr.msk.f32.mxu1 %vm320_vm0, %v302_v21 }
  0x31   : > { %1206 = vmatmul.mubr.msk.f32.gmra.mxu0 %vm320_vm0, %v287_v22  ;;  %1230 = vmatmul.mubr.msk.f32.gmra.mxu1 %vm320_vm0, %v303_v23 }
  0x32   : > { %1208 = vmatprep.mubr.msk.f32.mxu0 %vm320_vm0, %v288_v24  ;;  %1232 = vmatprep.mubr.msk.f32.mxu1 %vm320_vm0, %v304_v25 }
  0x35   : > { %1209 = vmatmul.mubr.msk.f32.gmra.mxu0 %vm320_vm0, %v289_v26  ;;  %1233 = vmatmul.mubr.msk.f32.gmra.mxu1 %vm320_vm0, %v305_v27 }
  0x36   : > { %1211 = vmatprep.mubr.msk.f32.mxu0 %vm320_vm0, %v290_v28  ;;  %1235 = vmatprep.mubr.msk.f32.mxu1 %vm320_vm0, %v306_v29 }
  0x39   : > { %1212 = vmatmul.mubr.msk.f32.gmra.mxu0 %vm320_vm0, %v291_v30  ;;  %1236 = vmatmul.mubr.msk.f32.gmra.mxu1 %vm320_vm0, %v307_v31 }
  0x3a   : > { %1214 = vmatprep.mubr.msk.f32.mxu0 %vm320_vm0, %v292_v32  ;;  %1238 = vmatprep.mubr.msk.f32.mxu1 %vm320_vm0, %v308_v33 }
  0x3d   : > { %1215 = vmatmul.mubr.msk.f32.gmra.mxu0 %vm320_vm0, %v293_v34  ;;  %1239 = vmatmul.mubr.msk.f32.gmra.mxu1 %vm320_vm0, %v309_v35 }
  0x3e   : > { %1217 = vmatprep.mubr.msk.f32.mxu0 %vm320_vm0, %v294_v36  ;;  %1241 = vmatprep.mubr.msk.f32.mxu1 %vm320_vm0, %v310_v37 }
  0x41   : > { %1218 = vmatmul.mubr.msk.f32.gmra.mxu0 %vm320_vm0, %v295_v38  ;;  %1242 = vmatmul.mubr.msk.f32.gmra.mxu1 %vm320_vm0, %v311_v39 }
  0xe5   : > { %v1198_v41 = vpop.f32.mrf.mxu0  ;;  %v1222_v42 = vpop.f32.mrf.mxu1 }
  0xe6   : > { %643 = vst [vmem:[%s1554_s19 + $0x8] sm:$0xff] %v1198_v41  ;;  %659 = vst [vmem:[%s1554_s19 + $0x88] sm:$0xff] %v1222_v42  ;;  %v698_v43 = vmul.f32 %v1222_v42, %v1552_v40  ;;  %v682_v44 = vmul.f32 %v1198_v41, %v1552_v40  ;;  %v818_v50 = vmul.f32 %v1198_v41, %v1563_v47 }
  0xe7   : > { %v483_v45 = vpop.f32.mrf.mxu0  ;;  %v563_v46 = vpop.f32.mrf.mxu1  ;;  %v834_v56 = vmul.f32 %v1222_v42, %v1563_v47 }
  0xe8   : > { %642 = vst [vmem:[%s1554_s19] sm:$0xff] %v483_v45  ;;  %658 = vst [vmem:[%s1554_s19 + $0x80] sm:$0xff] %v563_v46  ;;  %747 = vadd.xlane.f32.xlu1 %v698_v43  ;;  %715 = vadd.xlane.f32.xlu0 %v682_v44  ;;  %v681_v51 = vmul.f32 %v1552_v40, %v483_v45  ;;  %v697_v57 = vmul.f32 %v1552_v40, %v563_v46 }
  0xe9   : > { %v1201_v48 = vpop.f32.mrf.mxu0  ;;  %v1567_v49 = vpop.f32.mrf.mxu1  ;;  %v817_v63 = vmul.f32 %v1563_v47, %v483_v45  ;;  %v833_v5 = vmul.f32 %v1563_v47, %v563_v46 }
  0xea   : > { %645 = vst [vmem:[%s1554_s19 + $0x18] sm:$0xff] %v1201_v48  ;;  %661 = vst [vmem:[%s1554_s19 + $0x98] sm:$0xff] %v1567_v49  ;;  %v684_v60 = vmul.f32 %v1201_v48, %v1552_v40  ;;  %v700_v2 = vmul.f32 %v1567_v49, %v1552_v40  ;;  %v820_v8 = vmul.f32 %v1201_v48, %v1563_v47 }
  0xeb   : > { %v1574_v52 = vpop.f32.mrf.mxu0  ;;  %v1576_v53 = vpop.f32.mrf.mxu1  ;;  %v836_v18 = vmul.f32 %v1567_v49, %v1563_v47 }
  0xec   : > { %851 = vadd.xlane.f32.xlu1 %v818_v50  ;;  %713 = vadd.xlane.f32.xlu0 %v681_v51  ;;  %644 = vst [vmem:[%s1554_s19 + $0x10] sm:$0xff] %v1574_v52  ;;  %660 = vst [vmem:[%s1554_s19 + $0x90] sm:$0xff] %v1576_v53  ;;  %v699_v11 = vmul.f32 %v1552_v40, %v1576_v53  ;;  %v819_v19 = vmul.f32 %v1563_v47, %v1574_v52 }
  0xed   : > { %v1582_v54 = vpop.f32.mrf.mxu0  ;;  %v1584_v55 = vpop.f32.mrf.mxu1  ;;  %v835_v32 = vmul.f32 %v1563_v47, %v1576_v53  ;;  %v683_v33 = vmul.f32 %v1552_v40, %v1574_v52 }
  0xee   : > { %647 = vst [vmem:[%s1554_s19 + $0x28] sm:$0xff] %v1582_v54  ;;  %663 = vst [vmem:[%s1554_s19 + $0xa8] sm:$0xff] %v1584_v55  ;;  %v686_v49 = vmul.f32 %v1582_v54, %v1552_v40  ;;  %v702_v51 = vmul.f32 %v1584_v55, %v1552_v40  ;;  %v822_v53 = vmul.f32 %v1582_v54, %v1563_v47 }
  0xef   : > { %v1592_v58 = vpop.f32.mrf.mxu0  ;;  %v1594_v59 = vpop.f32.mrf.mxu1 }
  0xf0   : > { %883 = vadd.xlane.f32.xlu1 %v834_v56  ;;  %745 = vadd.xlane.f32.xlu0 %v697_v57  ;;  %646 = vst [vmem:[%s1554_s19 + $0x20] sm:$0xff] %v1592_v58  ;;  %662 = vst [vmem:[%s1554_s19 + $0xa0] sm:$0xff] %v1594_v59  ;;  %v685_v50 = vmul.f32 %v1552_v40, %v1592_v58  ;;  %v701_v52 = vmul.f32 %v1552_v40, %v1594_v59 }
  0xf1   : > { %v1601_v61 = vpop.f32.mrf.mxu0  ;;  %v1603_v62 = vpop.f32.mrf.mxu1  ;;  %v821_v56 = vmul.f32 %v1563_v47, %v1592_v58  ;;  %v838_v57 = vmul.f32 %v1584_v55, %v1563_v47 }
  0xf2   : > { %649 = vst [vmem:[%s1554_s19 + $0x38] sm:$0xff] %v1601_v61  ;;  %665 = vst [vmem:[%s1554_s19 + $0xb8] sm:$0xff] %v1603_v62  ;;  %v704_v54 = vmul.f32 %v1603_v62, %v1552_v40  ;;  %v824_v55 = vmul.f32 %v1601_v61, %v1563_v47 }
  0xf3   : > { %v1610_v0 = vpop.f32.mrf.mxu0  ;;  %v1612_v1 = vpop.f32.mrf.mxu1 }
  0xf4   : > { %849 = vadd.xlane.f32.xlu0 %v817_v63  ;;  %719 = vadd.xlane.f32.xlu1 %v684_v60  ;;  %648 = vst [vmem:[%s1554_s19 + $0x30] sm:$0xff] %v1610_v0  ;;  %664 = vst [vmem:[%s1554_s19 + $0xb0] sm:$0xff] %v1612_v1  ;;  %v837_v60 = vmul.f32 %v1563_v47, %v1594_v59  ;;  %v688_v63 = vmul.f32 %v1601_v61, %v1552_v40 }
  0xf5   : > { %v1620_v3 = vpop.f32.mrf.mxu0  ;;  %v1622_v4 = vpop.f32.mrf.mxu1  ;;  %v703_v58 = vmul.f32 %v1552_v40, %v1612_v1  ;;  %v823_v59 = vmul.f32 %v1563_v47, %v1610_v0 }
  0xf6   : > { %651 = vst [vmem:[%s1554_s19 + $0x48] sm:$0xff] %v1620_v3  ;;  %667 = vst [vmem:[%s1554_s19 + $0xc8] sm:$0xff] %v1622_v4  ;;  %v706_v61 = vmul.f32 %v1622_v4, %v1552_v40 }
  0xf7   : > { %v1629_v6 = vpop.f32.mrf.mxu0  ;;  %v1631_v7 = vpop.f32.mrf.mxu1 }
  0xf8   : > { %881 = vadd.xlane.f32.xlu0 %v833_v5  ;;  %751 = vadd.xlane.f32.xlu1 %v700_v2  ;;  %650 = vst [vmem:[%s1554_s19 + $0x40] sm:$0xff] %v1629_v6  ;;  %666 = vst [vmem:[%s1554_s19 + $0xc0] sm:$0xff] %v1631_v7  ;;  %v687_v2 = vmul.f32 %v1552_v40, %v1610_v0  ;;  %v840_v5 = vmul.f32 %v1603_v62, %v1563_v47 }
  0xf9   : > { %v1638_v9 = vpop.f32.mrf.mxu0  ;;  %v1237_v10 = vpop.f32.mrf.mxu1  ;;  %v705_v0 = vmul.f32 %v1552_v40, %v1631_v7  ;;  %v826_v62 = vmul.f32 %v1620_v3, %v1563_v47 }
  0xfa   : > { %653 = vst [vmem:[%s1554_s19 + $0x58] sm:$0xff] %v1638_v9  ;;  %669 = vst [vmem:[%s1554_s19 + $0xd8] sm:$0xff] %v1237_v10  ;;  %v1646_v12 = vmul.f32 %v1237_v10, %v1552_v40  ;;  %v1650_v13 = vmul.f32 %v1638_v9, %v1563_v47  ;;  %v1653_v14 = vmul.f32 %v1237_v10, %v1563_v47 }
  0xfb   : > { %v1655_v15 = vpop.f32.mrf.mxu0  ;;  %v1657_v16 = vpop.f32.mrf.mxu1  ;;  %v690_v10 = vmul.f32 %v1620_v3, %v1552_v40 }
  0xfc   : > { %749 = vadd.xlane.f32.xlu0 %v699_v11  ;;  %855 = vadd.xlane.f32.xlu1 %v820_v8  ;;  %652 = vst [vmem:[%s1554_s19 + $0x50] sm:$0xff] %v1655_v15  ;;  %668 = vst [vmem:[%s1554_s19 + $0xd0] sm:$0xff] %v1657_v16  ;;  %v1665_v17 = vmul.f32 %v1563_v47, %v1655_v15  ;;  %v1673_v21 = vmul.f32 %v1563_v47, %v1657_v16 }
  0xfd   : > { %v1216_v20 = vpop.f32.mrf.mxu0  ;;  %v1240_v22 = vpop.f32.mrf.mxu1  ;;  %v839_v8 = vmul.f32 %v1563_v47, %v1612_v1  ;;  %v689_v11 = vmul.f32 %v1552_v40, %v1629_v6  ;;  %v825_v1 = vmul.f32 %v1563_v47, %v1629_v6  ;;  %v707_v3 = vmul.f32 %v1552_v40, %v1657_v16 }
  0xfe   : > { %655 = vst [vmem:[%s1554_s19 + $0x68] sm:$0xff] %v1216_v20  ;;  %671 = vst [vmem:[%s1554_s19 + $0xe8] sm:$0xff] %v1240_v22  ;;  %v1678_v23 = vmul.f32 %v1216_v20, %v1552_v40  ;;  %v1681_v24 = vmul.f32 %v1240_v22, %v1552_v40  ;;  %v1684_v25 = vmul.f32 %v1216_v20, %v1563_v47 }
  0xff   : > { %v1687_v26 = vmul.f32 %v1240_v22, %v1563_v47  ;;  %v543_v27 = vpop.f32.mrf.mxu0  ;;  %v623_v28 = vpop.f32.mrf.mxu1  ;;  %v692_v20 = vmul.f32 %v1638_v9, %v1552_v40  ;;  %v691_v22 = vmul.f32 %v1552_v40, %v1655_v15 }
 0x100   : > { %887 = vadd.xlane.f32.xlu1 %v836_v18  ;;  %853 = vadd.xlane.f32.xlu0 %v819_v19  ;;  %654 = vst [vmem:[%s1554_s19 + $0x60] sm:$0xff] %v543_v27  ;;  %670 = vst [vmem:[%s1554_s19 + $0xe0] sm:$0xff] %v623_v28  ;;  %v1692_v29 = vmul.f32 %v1552_v40, %v543_v27  ;;  %v1695_v30 = vmul.f32 %v1552_v40, %v623_v28 }
 0x101   : > { %v1698_v31 = vmul.f32 %v1563_v47, %v543_v27  ;;  %v1219_v34 = vpop.f32.mrf.mxu0  ;;  %v1705_v35 = vmul.f32 %v1563_v47, %v623_v28  ;;  %v1243_v36 = vpop.f32.mrf.mxu1  ;;  %v842_v18 = vmul.f32 %v1622_v4, %v1563_v47  ;;  %v841_v19 = vmul.f32 %v1563_v47, %v1631_v7 }
 0x102   : > { %657 = vst [vmem:[%s1554_s19 + $0x78] sm:$0xff] %v1219_v34  ;;  %673 = vst [vmem:[%s1554_s19 + $0xf8] sm:$0xff] %v1243_v36  ;;  %v1710_v37 = vmul.f32 %v1219_v34, %v1552_v40  ;;  %v1713_v38 = vmul.f32 %v1243_v36, %v1552_v40  ;;  %v1716_v39 = vmul.f32 %v1219_v34, %v1563_v47 }
 0x103   : > { %v1719_v41 = vmul.f32 %v1243_v36, %v1563_v47  ;;  %v553_v42 = vpop.f32.mrf.mxu0  ;;  %v633_v43 = vpop.f32.mrf.mxu1 }
 0x104   : > { %885 = vadd.xlane.f32.xlu0 %v835_v32  ;;  %717 = vadd.xlane.f32.xlu1 %v683_v33  ;;  %656 = vst [vmem:[%s1554_s19 + $0x70] sm:$0xff] %v553_v42  ;;  %672 = vst [vmem:[%s1554_s19 + $0xf0] sm:$0xff] %v633_v43  ;;  %v1724_v44 = vmul.f32 %v1552_v40, %v553_v42  ;;  %v1727_v45 = vmul.f32 %v1552_v40, %v633_v43  ;;  %s1305_s19 = sshll.u32 %s1363_s25, 4  ;;  %s1306_s19 = int_to_ptr.vmem [resolvable:$false] %s1305_s19 }
 0x105   : > { %v1730_v46 = vmul.f32 %v1563_v47, %v553_v42  ;;  %v1733_v48 = vmul.f32 %v1563_v47, %v633_v43  ;;  %s1307_s20 = scalar_lea.vmem %s1306_s19, 8192  ;;  %p1308_p0 = scmp.lt.s32.totalorder %s1823_s12, %s1306_s19 }
 0x106   : > { %p1309_p1 = scmp.lt.s32.totalorder %s1307_s20, %s1301_s18 }
 0x108   : > { %723 = vadd.xlane.f32.xlu1 %v686_v49  ;;  %721 = vadd.xlane.f32.xlu0 %v685_v50  ;;  %p1310_p2 = por %p1309_p1, %p1308_p0 }
 0x10a   : > { %p1311_p3 = pnand %p1310_p2, %p1304_p13 }
 0x10c   : > { %755 = vadd.xlane.f32.xlu1 %v702_v51  ;;  %753 = vadd.xlane.f32.xlu0 %v701_v52 }
 0x110   : > { %859 = vadd.xlane.f32.xlu1 %v822_v53  ;;  %857 = vadd.xlane.f32.xlu0 %v821_v56 }
 0x114   : > { %891 = vadd.xlane.f32.xlu1 %v838_v57  ;;  %889 = vadd.xlane.f32.xlu0 %v837_v60 }
 0x118   : > { %727 = vadd.xlane.f32.xlu1 %v688_v63  ;;  %725 = vadd.xlane.f32.xlu0 %v687_v2 }
 0x11c   : > { %759 = vadd.xlane.f32.xlu1 %v704_v54  ;;  %757 = vadd.xlane.f32.xlu0 %v703_v58 }
 0x120   : > { %863 = vadd.xlane.f32.xlu1 %v824_v55  ;;  %861 = vadd.xlane.f32.xlu0 %v823_v59 }
 0x124   : > { %895 = vadd.xlane.f32.xlu1 %v840_v5  ;;  %893 = vadd.xlane.f32.xlu0 %v839_v8 }
 0x128   : > { %731 = vadd.xlane.f32.xlu1 %v690_v10  ;;  %729 = vadd.xlane.f32.xlu0 %v689_v11 }
 0x12c   : > { %763 = vadd.xlane.f32.xlu1 %v706_v61  ;;  %761 = vadd.xlane.f32.xlu0 %v705_v0 }
 0x130   : > { %867 = vadd.xlane.f32.xlu1 %v826_v62  ;;  %865 = vadd.xlane.f32.xlu0 %v825_v1 }
 0x134   : > { %899 = vadd.xlane.f32.xlu1 %v842_v18  ;;  %897 = vadd.xlane.f32.xlu0 %v841_v19 }
 0x138   : > { %735 = vadd.xlane.f32.xlu1 %v692_v20  ;;  %733 = vadd.xlane.f32.xlu0 %v691_v22 }
 0x13c   : > { %767 = vadd.xlane.f32.xlu1 %v1646_v12  ;;  %765 = vadd.xlane.f32.xlu0 %v707_v3 }
 0x140   : > { %871 = vadd.xlane.f32.xlu1 %v1650_v13  ;;  %869 = vadd.xlane.f32.xlu0 %v1665_v17 }
 0x144   : > { %903 = vadd.xlane.f32.xlu1 %v1653_v14  ;;  %901 = vadd.xlane.f32.xlu0 %v1673_v21 }
 0x148   : > { %739 = vadd.xlane.f32.xlu1 %v1678_v23  ;;  %737 = vadd.xlane.f32.xlu0 %v1692_v29 }
 0x14c   : > { %771 = vadd.xlane.f32.xlu1 %v1681_v24  ;;  %769 = vadd.xlane.f32.xlu0 %v1695_v30 }
 0x150   : > { %875 = vadd.xlane.f32.xlu1 %v1684_v25  ;;  %873 = vadd.xlane.f32.xlu0 %v1698_v31 }
 0x154   : > { %907 = vadd.xlane.f32.xlu1 %v1687_v26  ;;  %905 = vadd.xlane.f32.xlu0 %v1705_v35 }
 0x158   : > { %743 = vadd.xlane.f32.xlu1 %v1710_v37  ;;  %741 = vadd.xlane.f32.xlu0 %v1724_v44 }
 0x15c   : > { %775 = vadd.xlane.f32.xlu1 %v1713_v38  ;;  %773 = vadd.xlane.f32.xlu0 %v1727_v45 }
 0x160   : > { %879 = vadd.xlane.f32.xlu1 %v1716_v39  ;;  %877 = vadd.xlane.f32.xlu0 %v1730_v46 }
 0x164   : > { %911 = vadd.xlane.f32.xlu1 %v1719_v41  ;;  %909 = vadd.xlane.f32.xlu0 %v1733_v48 }
 0x171   : > { %v748_v40 = vpop.xlane.xlu1 %747  ;;  %v716_v47 = vpop.xlane.xlu0 %715 }
 0x172   : > { %1314 = shalt.err (!%p1311_p3)
}
 0x173   : > { %s1315_s15 = scalar_lea.hbm %s1821_s16, 4096  ;;  %s1319_s9 = scalar_lea.hbm %s2005_s4, 16384 }
 0x174   : > { %p1316_p4 = scmp.ne.s32.totalorder %s1821_s16, %s1315_s15  ;;  %p1320_p9 = scmp.lt.s32.totalorder %s1821_s16, %s2005_s4 }
 0x175   : > { %p1321_p10 = scmp.lt.s32.totalorder %s1319_s9, %s1315_s15 }
 0x176   : > { %p1317_p7 = pnand %p1316_p4, %p1439_p5 }
 0x177   : > { %p1322_p11 = por %p1321_p10, %p1320_p9 }
 0x178   : > { %p1318_p8 = pneg %p1317_p7 }
 0x17a   : > { %p1323_p12 = pnand %p1322_p11, %p1318_p8 }
 0x17c   : > { %1326 = shalt.err (!%p1323_p12)
}
 0x17d   : > { %s1364_s14 = smov 128   ;;  %s1365_s18 = smov 8   ;;  %795 = vst.msk [vmem:[%s1814_s10 + $0x88] sm:$0xff] %vm777_vm1, %v748_v40  ;;  %779 = vst.msk [vmem:[%s1814_s10 + $0x8] sm:$0xff] %vm777_vm1, %v716_v47  ;;  %v852_v4 = vpop.xlane.xlu1 %851  ;;  %v714_v6 = vpop.xlane.xlu0 %713 }
 0x17e   : > { %1260 = dma.vmem_to_hbm [thread:$0]  (%p1439_p5), %s1823_s12, 4096, %s1821_s16, %s1827_s17, %s1364_s14, %s1364_s14, %s1365_s18  }
 0x17f   : > { %s1858_s20 = scalar_lea.vmem %s2007_s6, %s1468_s28  ;;  %778 = vst.msk [vmem:[%s1814_s10] sm:$0xff] %vm777_vm1, %v714_v6 }
 0x180   : > { %914 = vst.msk [vmem:[%s1858_s20 + $0x8] sm:$0xff] %vm777_vm1, %v852_v4 }
 0x181   : > { %v884_v7 = vpop.xlane.xlu1 %883  ;;  %v746_v9 = vpop.xlane.xlu0 %745 }
 0x182   : > { %930 = vst.msk [vmem:[%s1858_s20 + $0x88] sm:$0xff] %vm777_vm1, %v884_v7  ;;  %794 = vst.msk [vmem:[%s1814_s10 + $0x80] sm:$0xff] %vm777_vm1, %v746_v9 }
 0x185   : > { %v850_v12 = vpop.xlane.xlu0 %849  ;;  %v720_v13 = vpop.xlane.xlu1 %719 }
 0x186   : > { %913 = vst.msk [vmem:[%s1858_s20] sm:$0xff] %vm777_vm1, %v850_v12  ;;  %781 = vst.msk [vmem:[%s1814_s10 + $0x18] sm:$0xff] %vm777_vm1, %v720_v13 }
 0x189   : > { %v882_v14 = vpop.xlane.xlu0 %881  ;;  %v752_v15 = vpop.xlane.xlu1 %751 }
 0x18a   : > { %929 = vst.msk [vmem:[%s1858_s20 + $0x80] sm:$0xff] %vm777_vm1, %v882_v14  ;;  %797 = vst.msk [vmem:[%s1814_s10 + $0x98] sm:$0xff] %vm777_vm1, %v752_v15 }
 0x18d   : > { %v750_v16 = vpop.xlane.xlu0 %749  ;;  %v856_v17 = vpop.xlane.xlu1 %855 }
 0x18e   : > { %796 = vst.msk [vmem:[%s1814_s10 + $0x90] sm:$0xff] %vm777_vm1, %v750_v16  ;;  %916 = vst.msk [vmem:[%s1858_s20 + $0x18] sm:$0xff] %vm777_vm1, %v856_v17 }
 0x191   : > { %v888_v21 = vpop.xlane.xlu1 %887  ;;  %v854_v23 = vpop.xlane.xlu0 %853 }
 0x192   : > { %932 = vst.msk [vmem:[%s1858_s20 + $0x98] sm:$0xff] %vm777_vm1, %v888_v21  ;;  %915 = vst.msk [vmem:[%s1858_s20 + $0x10] sm:$0xff] %vm777_vm1, %v854_v23 }
 0x195   : > { %v886_v24 = vpop.xlane.xlu0 %885  ;;  %v718_v25 = vpop.xlane.xlu1 %717 }
 0x196   : > { %931 = vst.msk [vmem:[%s1858_s20 + $0x90] sm:$0xff] %vm777_vm1, %v886_v24  ;;  %780 = vst.msk [vmem:[%s1814_s10 + $0x10] sm:$0xff] %vm777_vm1, %v718_v25 }
 0x199   : > { %v724_v26 = vpop.xlane.xlu1 %723  ;;  %v722_v27 = vpop.xlane.xlu0 %721 }
 0x19a   : > { %783 = vst.msk [vmem:[%s1814_s10 + $0x28] sm:$0xff] %vm777_vm1, %v724_v26  ;;  %782 = vst.msk [vmem:[%s1814_s10 + $0x20] sm:$0xff] %vm777_vm1, %v722_v27 }
 0x19d   : > { %v756_v28 = vpop.xlane.xlu1 %755  ;;  %v754_v29 = vpop.xlane.xlu0 %753 }
 0x19e   : > { %799 = vst.msk [vmem:[%s1814_s10 + $0xa8] sm:$0xff] %vm777_vm1, %v756_v28  ;;  %798 = vst.msk [vmem:[%s1814_s10 + $0xa0] sm:$0xff] %vm777_vm1, %v754_v29 }
 0x1a1   : > { %v860_v30 = vpop.xlane.xlu1 %859  ;;  %v858_v31 = vpop.xlane.xlu0 %857 }
 0x1a2   : > { %918 = vst.msk [vmem:[%s1858_s20 + $0x28] sm:$0xff] %vm777_vm1, %v860_v30  ;;  %917 = vst.msk [vmem:[%s1858_s20 + $0x20] sm:$0xff] %vm777_vm1, %v858_v31 }
 0x1a5   : > { %v892_v32 = vpop.xlane.xlu1 %891  ;;  %v890_v33 = vpop.xlane.xlu0 %889 }
 0x1a6   : > { %934 = vst.msk [vmem:[%s1858_s20 + $0xa8] sm:$0xff] %vm777_vm1, %v892_v32  ;;  %933 = vst.msk [vmem:[%s1858_s20 + $0xa0] sm:$0xff] %vm777_vm1, %v890_v33 }
 0x1a9   : > { %v728_v34 = vpop.xlane.xlu1 %727  ;;  %v726_v35 = vpop.xlane.xlu0 %725 }
 0x1aa   : > { %785 = vst.msk [vmem:[%s1814_s10 + $0x38] sm:$0xff] %vm777_vm1, %v728_v34  ;;  %784 = vst.msk [vmem:[%s1814_s10 + $0x30] sm:$0xff] %vm777_vm1, %v726_v35 }
 0x1ad   : > { %v760_v36 = vpop.xlane.xlu1 %759  ;;  %v758_v37 = vpop.xlane.xlu0 %757 }
 0x1ae   : > { %801 = vst.msk [vmem:[%s1814_s10 + $0xb8] sm:$0xff] %vm777_vm1, %v760_v36  ;;  %800 = vst.msk [vmem:[%s1814_s10 + $0xb0] sm:$0xff] %vm777_vm1, %v758_v37 }
 0x1b1   : > { %v864_v38 = vpop.xlane.xlu1 %863  ;;  %v862_v39 = vpop.xlane.xlu0 %861 }
 0x1b2   : > { %920 = vst.msk [vmem:[%s1858_s20 + $0x38] sm:$0xff] %vm777_vm1, %v864_v38  ;;  %919 = vst.msk [vmem:[%s1858_s20 + $0x30] sm:$0xff] %vm777_vm1, %v862_v39 }
 0x1b5   : > { %v896_v41 = vpop.xlane.xlu1 %895  ;;  %v894_v42 = vpop.xlane.xlu0 %893 }
 0x1b6   : > { %936 = vst.msk [vmem:[%s1858_s20 + $0xb8] sm:$0xff] %vm777_vm1, %v896_v41  ;;  %935 = vst.msk [vmem:[%s1858_s20 + $0xb0] sm:$0xff] %vm777_vm1, %v894_v42 }
 0x1b9   : > { %v732_v43 = vpop.xlane.xlu1 %731  ;;  %v730_v44 = vpop.xlane.xlu0 %729 }
 0x1ba   : > { %787 = vst.msk [vmem:[%s1814_s10 + $0x48] sm:$0xff] %vm777_vm1, %v732_v43  ;;  %786 = vst.msk [vmem:[%s1814_s10 + $0x40] sm:$0xff] %vm777_vm1, %v730_v44 }
 0x1bd   : > { %v764_v45 = vpop.xlane.xlu1 %763  ;;  %v762_v46 = vpop.xlane.xlu0 %761 }
 0x1be   : > { %803 = vst.msk [vmem:[%s1814_s10 + $0xc8] sm:$0xff] %vm777_vm1, %v764_v45  ;;  %802 = vst.msk [vmem:[%s1814_s10 + $0xc0] sm:$0xff] %vm777_vm1, %v762_v46 }
 0x1c1   : > { %v868_v48 = vpop.xlane.xlu1 %867  ;;  %v866_v49 = vpop.xlane.xlu0 %865 }
 0x1c2   : > { %922 = vst.msk [vmem:[%s1858_s20 + $0x48] sm:$0xff] %vm777_vm1, %v868_v48  ;;  %921 = vst.msk [vmem:[%s1858_s20 + $0x40] sm:$0xff] %vm777_vm1, %v866_v49 }
 0x1c5   : > { %v900_v50 = vpop.xlane.xlu1 %899  ;;  %v898_v51 = vpop.xlane.xlu0 %897 }
 0x1c6   : > { %938 = vst.msk [vmem:[%s1858_s20 + $0xc8] sm:$0xff] %vm777_vm1, %v900_v50  ;;  %937 = vst.msk [vmem:[%s1858_s20 + $0xc0] sm:$0xff] %vm777_vm1, %v898_v51 }
 0x1c9   : > { %v736_v52 = vpop.xlane.xlu1 %735  ;;  %v734_v53 = vpop.xlane.xlu0 %733 }
 0x1ca   : > { %789 = vst.msk [vmem:[%s1814_s10 + $0x58] sm:$0xff] %vm777_vm1, %v736_v52  ;;  %788 = vst.msk [vmem:[%s1814_s10 + $0x50] sm:$0xff] %vm777_vm1, %v734_v53 }
 0x1cd   : > { %v768_v56 = vpop.xlane.xlu1 %767  ;;  %v766_v57 = vpop.xlane.xlu0 %765 }
 0x1ce   : > { %805 = vst.msk [vmem:[%s1814_s10 + $0xd8] sm:$0xff] %vm777_vm1, %v768_v56  ;;  %804 = vst.msk [vmem:[%s1814_s10 + $0xd0] sm:$0xff] %vm777_vm1, %v766_v57 }
 0x1d1   : > { %v872_v60 = vpop.xlane.xlu1 %871  ;;  %v870_v63 = vpop.xlane.xlu0 %869 }
 0x1d2   : > { %924 = vst.msk [vmem:[%s1858_s20 + $0x58] sm:$0xff] %vm777_vm1, %v872_v60  ;;  %923 = vst.msk [vmem:[%s1858_s20 + $0x50] sm:$0xff] %vm777_vm1, %v870_v63 }
 0x1d5   : > { %v904_v2 = vpop.xlane.xlu1 %903  ;;  %v902_v54 = vpop.xlane.xlu0 %901 }
 0x1d6   : > { %940 = vst.msk [vmem:[%s1858_s20 + $0xd8] sm:$0xff] %vm777_vm1, %v904_v2  ;;  %939 = vst.msk [vmem:[%s1858_s20 + $0xd0] sm:$0xff] %vm777_vm1, %v902_v54 }
 0x1d9   : > { %v740_v58 = vpop.xlane.xlu1 %739  ;;  %v738_v55 = vpop.xlane.xlu0 %737 }
 0x1da   : > { %791 = vst.msk [vmem:[%s1814_s10 + $0x68] sm:$0xff] %vm777_vm1, %v740_v58  ;;  %790 = vst.msk [vmem:[%s1814_s10 + $0x60] sm:$0xff] %vm777_vm1, %v738_v55 }
 0x1dd   : > { %v772_v59 = vpop.xlane.xlu1 %771  ;;  %v770_v5 = vpop.xlane.xlu0 %769 }
 0x1de   : > { %807 = vst.msk [vmem:[%s1814_s10 + $0xe8] sm:$0xff] %vm777_vm1, %v772_v59  ;;  %806 = vst.msk [vmem:[%s1814_s10 + $0xe0] sm:$0xff] %vm777_vm1, %v770_v5 }
 0x1e1   : > { %v876_v8 = vpop.xlane.xlu1 %875  ;;  %v874_v10 = vpop.xlane.xlu0 %873 }
 0x1e2   : > { %926 = vst.msk [vmem:[%s1858_s20 + $0x68] sm:$0xff] %vm777_vm1, %v876_v8  ;;  %925 = vst.msk [vmem:[%s1858_s20 + $0x60] sm:$0xff] %vm777_vm1, %v874_v10 }
 0x1e5   : > { %v908_v11 = vpop.xlane.xlu1 %907  ;;  %v906_v61 = vpop.xlane.xlu0 %905 }
 0x1e6   : > { %942 = vst.msk [vmem:[%s1858_s20 + $0xe8] sm:$0xff] %vm777_vm1, %v908_v11  ;;  %941 = vst.msk [vmem:[%s1858_s20 + $0xe0] sm:$0xff] %vm777_vm1, %v906_v61 }
 0x1e9   : > { %v744_v0 = vpop.xlane.xlu1 %743  ;;  %v742_v62 = vpop.xlane.xlu0 %741 }
 0x1ea   : > { %793 = vst.msk [vmem:[%s1814_s10 + $0x78] sm:$0xff] %vm777_vm1, %v744_v0  ;;  %792 = vst.msk [vmem:[%s1814_s10 + $0x70] sm:$0xff] %vm777_vm1, %v742_v62 }
 0x1ed   : > { %v776_v1 = vpop.xlane.xlu1 %775  ;;  %v774_v18 = vpop.xlane.xlu0 %773 }
 0x1ee   : > { %809 = vst.msk [vmem:[%s1814_s10 + $0xf8] sm:$0xff] %vm777_vm1, %v776_v1  ;;  %808 = vst.msk [vmem:[%s1814_s10 + $0xf0] sm:$0xff] %vm777_vm1, %v774_v18 }
 0x1f1   : > { %v880_v19 = vpop.xlane.xlu1 %879  ;;  %v878_v20 = vpop.xlane.xlu0 %877 }
 0x1f2   : > { %928 = vst.msk [vmem:[%s1858_s20 + $0x78] sm:$0xff] %vm777_vm1, %v880_v19  ;;  %927 = vst.msk [vmem:[%s1858_s20 + $0x70] sm:$0xff] %vm777_vm1, %v878_v20 }
 0x1f5   : > { %v912_v22 = vpop.xlane.xlu1 %911  ;;  %v910_v3 = vpop.xlane.xlu0 %909 }
 0x1f6   : > { %944 = vst.msk [vmem:[%s1858_s20 + $0xf8] sm:$0xff] %vm777_vm1, %v912_v22  ;;  %943 = vst.msk [vmem:[%s1858_s20 + $0xf0] sm:$0xff] %vm777_vm1, %v910_v3 }
 0x1f7 PF: > { %p1266_p5 = scmp.ge.s32.totalorder %s1361_s24, 2  ;;  %s992_s7 = sand.u32 1, %s1349_s21  }
 0x1f8   : > { %s993_s28 = scalar_lea.sflag [#allocation3], %s992_s7 }
 0x1f9   : > { %p1263_p13 = pnand %p1266_p5, %p1443_p6 }
 0x1fb   : > { %p1264_p0 = pneg %p1263_p13 }
 0x1fd   : > { %1344 = dma.done.wait (%p1264_p0), %s993_s28, 4096  }
 0x1fe   : > { %1346 = vsyncadd (%p1264_p0), %s993_s28, 4294963200  ;;  %p17_p1 = scmp.ge.s32.totalorder %s1426_s27, 6   ;;  %s2010_s21 = smov %s1353_s22 }
 0x1ff   : > { %s2011_s22 = smov %s1357_s23  ;;  %s2012_s23 = smov %s1437_s30 }
 0x200   : > { %s2013_s24 = smov %s1426_s27  ;;  %19 = sbr.rel (!%p17_p1) target bundleno = 3 (0x3), region = 95 }
 0x205   :  { %1014 = vsyncpa [#allocation3], 1 }
 0x206   :  { %1016 = vsyncpa [#allocation3 + $0x1], 1 }

</bundles_post_ra>
